<compile_context>
chip_gen: v6e
topology: v6e:2x2x1
jax: 0.10.0
libtpu: 0.0.40
codegen_flags: <defaults>
</compile_context>

<pallas_src>
import jax
import jax.numpy as jnp
from jax import lax
from jax.experimental import pallas as pl
from jax.experimental.pallas import tpu as pltpu


def _policy_value_kernel(x_ref, w1_ref, w2_ref, o_ref):
    x = x_ref[...]        # (TB, D_in)  bf16  -- native layout, no transpose
    w1 = w1_ref[...]      # (H, D_in)   bf16  -- PyTorch Linear layout
    w2 = w2_ref[...]      # (1, H)      bf16  -- PyTorch Linear layout

    # Hidden layer: x @ w1.T on the MXU (transposed RHS handled natively),
    # f32 accumulation.
    h = lax.dot_general(x, w1, (((1,), (1,)), ((), ())),
                        preferred_element_type=jnp.float32)      # (TB, H) f32
    h = jnp.tanh(h)                                              # EUP, f32

    # Output layer (H -> 1) as w2 @ h.T so the MXU emits a lane-dense (1, TB)
    # row (batch on lanes) instead of a (TB, 1) sublane-major column.
    out = lax.dot_general(w2, h.astype(w2.dtype), (((1,), (1,)), ((), ())),
                          preferred_element_type=jnp.float32)    # (1, TB) f32
    o_ref[...] = out.astype(o_ref.dtype)


def _round_up(a, m):
    return ((a + m - 1) // m) * m


def _choose_batch_tile(B, D_in, H, act_itemsize, vmem_budget_bytes,
                       max_rows_cap=8192):
    """Largest batch tile that fits the VMEM budget; >=2 grid steps if B > 256."""
    # Per-row cost: 2x double-buffered x rows + f32 hidden activations + 2x out row.
    per_row = 2 * D_in * act_itemsize + 4 * H + 2 * 4
    # Resident weights (single-buffered when Buffered(1) is honoured; keep 2x margin).
    weight_bytes = 2 * (H * D_in + H) * act_itemsize
    rows = max(128, (vmem_budget_bytes - weight_bytes) // per_row)
    rows = min(int(rows) // 128 * 128, max_rows_cap)
    if B <= min(rows, 256):
        return B                       # single full-extent block, no alignment issues
    # Tiled path: multiple of 128 (lane-dense out block + bf16 sublane packing),
    # and at least 2 grid steps so v7x's second TensorCore gets work.
    return max(128, min(rows, _round_up(pl.cdiv(B, 2), 128)))


def policy_or_value_forward(x, w_hidden, w_out, *,
                            compute_dtype=jnp.bfloat16,
                            vmem_budget_bytes=24 * 1024 * 1024):
    """x: (B, num_inputs); w_hidden: (num_hidden, num_inputs); w_out: (1, num_hidden)."""
    B, D_in = x.shape
    H = w_hidden.shape[0]
    out_dtype = x.dtype

    # bf16 operands for the MXU (f32 accumulation stays inside the kernel).
    xc = x.astype(compute_dtype)
    w1 = w_hidden.astype(compute_dtype)
    w2 = w_out.astype(compute_dtype)

    act_itemsize = jnp.dtype(compute_dtype).itemsize
    TB = _choose_batch_tile(B, D_in, H, act_itemsize, vmem_budget_bytes)
    n_blocks = pl.cdiv(B, TB)

    def run(single_buffer_weights):
        w_kwargs = (
            {"pipeline_mode": pl.Buffered(1)} if single_buffer_weights else {}
        )
        return pl.pallas_call(
            _policy_value_kernel,
            # Lane-dense output slab: (1, n_blocks*TB); sliced to (B, 1) below.
            out_shape=jax.ShapeDtypeStruct((1, n_blocks * TB), out_dtype),
            grid=(n_blocks,),
            in_specs=[
                pl.BlockSpec((TB, D_in), lambda i: (i, 0)),            # x tile
                pl.BlockSpec((H, D_in), lambda i: (0, 0), **w_kwargs),  # w_hidden, resident
                pl.BlockSpec((1, H), lambda i: (0, 0), **w_kwargs),     # w_out, resident
            ],
            out_specs=pl.BlockSpec((1, TB), lambda i: (0, i)),
            compiler_params=pltpu.CompilerParams(
                dimension_semantics=("parallel",),
                vmem_limit_bytes=48 * 1024 * 1024,
            ),
        )(xc, w1, w2)

    try:
        out_row = run(True)
    except Exception:
        # Fallback for JAX builds without pipeline_mode / Buffered(1) support.
        out_row = run(False)

    # (1, n_blocks*TB) -> drop padded tail rows -> (B, 1)
    return out_row.reshape(n_blocks * TB)[:B].reshape(B, 1)


def _reference(x, w_hidden, w_out):
    return jnp.tanh(x @ w_hidden.T) @ w_out.T


if __name__ == "__main__":
    # Small shapes consistent with the module: batch=8, num_inputs=16, num_hidden=32.
    B, NUM_INPUTS, NUM_HIDDEN = 8, 16, 32

    key = jax.random.PRNGKey(0)
    kx, kw1, kw2, kx2 = jax.random.split(key, 4)

    x = jax.random.normal(kx, (B, NUM_INPUTS), dtype=jnp.float32)
    bound1 = 1.0 / jnp.sqrt(NUM_INPUTS)
    bound2 = 1.0 / jnp.sqrt(NUM_HIDDEN)
    w_hidden = jax.random.uniform(kw1, (NUM_HIDDEN, NUM_INPUTS),
                                  minval=-bound1, maxval=bound1, dtype=jnp.float32)
    w_out = jax.random.uniform(kw2, (1, NUM_HIDDEN),
                               minval=-bound2, maxval=bound2, dtype=jnp.float32)

    out = policy_or_value_forward(x, w_hidden, w_out)
    out = jax.block_until_ready(out)

    ref = _reference(x, w_hidden, w_out)
    assert out.shape == (B, 1)
    # bf16 MXU operands (f32 accumulation) -> loosened tolerance.
    assert jnp.allclose(out, ref, atol=2e-2, rtol=2e-2)

    # Secondary check: large batch exercises the tiled, 2-step "parallel" grid
    # path with the lane-dense (1, TB) output blocks.
    B2 = 512
    x2 = jax.random.normal(kx2, (B2, NUM_INPUTS), dtype=jnp.float32)
    out2 = jax.block_until_ready(policy_or_value_forward(x2, w_hidden, w_out))
    ref2 = _reference(x2, w_hidden, w_out)
    assert out2.shape == (B2, 1)
    assert jnp.allclose(out2, ref2, atol=2e-2, rtol=2e-2)

    print("KERNEL_OK")
</pallas_src>

<mosaic_0001>
module attributes {stable_mosaic.version = 11 : i64} {
  func.func @_policy_value_kernel(%arg0: i32, %arg1: memref<8x16xbf16, #tpu.memory_space<vmem>>, %arg2: memref<32x16xbf16, #tpu.memory_space<vmem>>, %arg3: memref<1x32xbf16, #tpu.memory_space<vmem>>, %arg4: memref<1x8xf32, #tpu.memory_space<vmem>>) attributes {dimension_semantics = [#tpu.dimension_semantics<parallel>], iteration_bounds = array<i64: 1>, scalar_prefetch = 0 : i64, scratch_operands = 0 : i64, tpu.core_type = #tpu.core_type<tc>, window_params = [{transform_indices = @transform_0, window_bounds = array<i64: 8, 16>}, {pipeline_mode = #tpu.pipeline_mode<synchronous>, transform_indices = @transform_1, window_bounds = array<i64: 32, 16>}, {pipeline_mode = #tpu.pipeline_mode<synchronous>, transform_indices = @transform_2, window_bounds = array<i64: 1, 32>}, {transform_indices = @transform_3, window_bounds = array<i64: 1, 8>}]} {
    %c0 = arith.constant 0 : index
    %c0_0 = arith.constant 0 : index
    %0 = vector.load %arg1[%c0, %c0_0] : memref<8x16xbf16, #tpu.memory_space<vmem>>, vector<8x16xbf16>
    %c0_1 = arith.constant 0 : index
    %c0_2 = arith.constant 0 : index
    %1 = vector.load %arg2[%c0_1, %c0_2] : memref<32x16xbf16, #tpu.memory_space<vmem>>, vector<32x16xbf16>
    %c0_3 = arith.constant 0 : index
    %c0_4 = arith.constant 0 : index
    %2 = vector.load %arg3[%c0_3, %c0_4] : memref<1x32xbf16, #tpu.memory_space<vmem>>, vector<1x32xbf16>
    %cst = arith.constant dense<0.000000e+00> : vector<8x32xf32>
    %3 = tpu.matmul %0, %1, %cst {dimension_numbers = #tpu.dot_dimension_numbers<[1], [1], [0], [0], [0, 0, 1, 0], [], []>} : vector<8x16xbf16>, vector<32x16xbf16>, vector<8x32xf32> -> vector<8x32xf32>
    %4 = math.tanh %3 : vector<8x32xf32>
    %5 = arith.truncf %4 : vector<8x32xf32> to vector<8x32xbf16>
    %cst_5 = arith.constant dense<0.000000e+00> : vector<1x8xf32>
    %6 = tpu.matmul %2, %5, %cst_5 {dimension_numbers = #tpu.dot_dimension_numbers<[1], [1], [0], [0], [0, 0, 1, 0], [], []>} : vector<1x32xbf16>, vector<8x32xbf16>, vector<1x8xf32> -> vector<1x8xf32>
    %c0_6 = arith.constant 0 : index
    %c0_7 = arith.constant 0 : index
    %7 = vector.load %arg4[%c0_6, %c0_7] : memref<1x8xf32, #tpu.memory_space<vmem>>, vector<1x8xf32>
    tpu.vector_store %arg4[%c0_6, %c0_7], %6 {strides = array<i32>} : memref<1x8xf32, #tpu.memory_space<vmem>>, vector<1x8xf32>,
    return
  }
  func.func @transform_0(%arg0: i32) -> (i32, i32) {
    %c0_i32 = arith.constant 0 : i32
    %c0_i32_0 = arith.constant 0 : i32
    return %arg0, %c0_i32 : i32, i32
  }
  func.func @transform_1(%arg0: i32) -> (i32, i32) {
    %c0_i32 = arith.constant 0 : i32
    %c0_i32_0 = arith.constant 0 : i32
    %c0_i32_1 = arith.constant 0 : i32
    return %c0_i32, %c0_i32_0 : i32, i32
  }
  func.func @transform_2(%arg0: i32) -> (i32, i32) {
    %c0_i32 = arith.constant 0 : i32
    %c0_i32_0 = arith.constant 0 : i32
    %c0_i32_1 = arith.constant 0 : i32
    return %c0_i32, %c0_i32_0 : i32, i32
  }
  func.func @transform_3(%arg0: i32) -> (i32, i32) {
    %c0_i32 = arith.constant 0 : i32
    %c0_i32_0 = arith.constant 0 : i32
    return %c0_i32, %arg0 : i32, i32
  }
}

module attributes {stable_mosaic.version = 11 : i64} {
  func.func @_policy_value_kernel(%arg0: i32, %arg1: memref<8x16xbf16, #tpu.memory_space<vmem>>, %arg2: memref<32x16xbf16, #tpu.memory_space<vmem>>, %arg3: memref<1x32xbf16, #tpu.memory_space<vmem>>, %arg4: memref<1x8xf32, #tpu.memory_space<vmem>>) attributes {dimension_semantics = [#tpu.dimension_semantics<parallel>], iteration_bounds = array<i64: 1>, scalar_prefetch = 0 : i64, scratch_operands = 0 : i64, tpu.core_type = #tpu.core_type<tc>, window_params = [{transform_indices = @transform_0, window_bounds = array<i64: 8, 16>}, {pipeline_mode = #tpu.pipeline_mode<synchronous>, transform_indices = @transform_1, window_bounds = array<i64: 32, 16>}, {pipeline_mode = #tpu.pipeline_mode<synchronous>, transform_indices = @transform_2, window_bounds = array<i64: 1, 32>}, {transform_indices = @transform_3, window_bounds = array<i64: 1, 8>}]} {
    %c0 = arith.constant 0 : index
    %c0_0 = arith.constant 0 : index
    %0 = vector.load %arg1[%c0, %c0_0] : memref<8x16xbf16, #tpu.memory_space<vmem>>, vector<8x16xbf16>
    %c0_1 = arith.constant 0 : index
    %c0_2 = arith.constant 0 : index
    %1 = vector.load %arg2[%c0_1, %c0_2] : memref<32x16xbf16, #tpu.memory_space<vmem>>, vector<32x16xbf16>
    %c0_3 = arith.constant 0 : index
    %c0_4 = arith.constant 0 : index
    %2 = vector.load %arg3[%c0_3, %c0_4] : memref<1x32xbf16, #tpu.memory_space<vmem>>, vector<1x32xbf16>
    %cst = arith.constant dense<0.000000e+00> : vector<8x32xf32>
    %3 = tpu.matmul %0, %1, %cst {dimension_numbers = #tpu.dot_dimension_numbers<[1], [1], [0], [0], [0, 0, 1, 0], [], []>} : vector<8x16xbf16>, vector<32x16xbf16>, vector<8x32xf32> -> vector<8x32xf32>
    %4 = math.tanh %3 : vector<8x32xf32>
    %5 = arith.truncf %4 : vector<8x32xf32> to vector<8x32xbf16>
    %cst_5 = arith.constant dense<0.000000e+00> : vector<1x8xf32>
    %6 = tpu.matmul %2, %5, %cst_5 {dimension_numbers = #tpu.dot_dimension_numbers<[1], [1], [0], [0], [0, 0, 1, 0], [], []>} : vector<1x32xbf16>, vector<8x32xbf16>, vector<1x8xf32> -> vector<1x8xf32>
    %c0_6 = arith.constant 0 : index
    %c0_7 = arith.constant 0 : index
    %7 = vector.load %arg4[%c0_6, %c0_7] : memref<1x8xf32, #tpu.memory_space<vmem>>, vector<1x8xf32>
    tpu.vector_store %arg4[%c0_6, %c0_7], %6 {strides = array<i32>} : memref<1x8xf32, #tpu.memory_space<vmem>>, vector<1x8xf32>,
    return
  }
  func.func @transform_0(%arg0: i32) -> (i32, i32) {
    %c0_i32 = arith.constant 0 : i32
    %c0_i32_0 = arith.constant 0 : i32
    return %arg0, %c0_i32 : i32, i32
  }
  func.func @transform_1(%arg0: i32) -> (i32, i32) {
    %c0_i32 = arith.constant 0 : i32
    %c0_i32_0 = arith.constant 0 : i32
    %c0_i32_1 = arith.constant 0 : i32
    return %c0_i32, %c0_i32_0 : i32, i32
  }
  func.func @transform_2(%arg0: i32) -> (i32, i32) {
    %c0_i32 = arith.constant 0 : i32
    %c0_i32_0 = arith.constant 0 : i32
    %c0_i32_1 = arith.constant 0 : i32
    return %c0_i32, %c0_i32_0 : i32, i32
  }
  func.func @transform_3(%arg0: i32) -> (i32, i32) {
    %c0_i32 = arith.constant 0 : i32
    %c0_i32_0 = arith.constant 0 : i32
    return %c0_i32, %arg0 : i32, i32
  }
}

</mosaic_0001>

<bundles_post_ra>
// kernel: tpu_custom_call.1
= control target key start
LH: loop header
LB: loop body
LE: loop exit
PB: predicated region body
PF: predicated region fallthrough
CT: control target
= control target key end

     0   :  { %v199_v1 = vmov 0.0   ;;  %vm32_vm0 = vcmask 130048   ;;  %s237_s0 = inlined_call_operand.vmem [shape: bf16[8,16], index: 0, kind: input, shape index: {}]   ;;  %s238_s1 = inlined_call_operand.vmem [shape: bf16[32,16], index: 1, kind: input, shape index: {}]   ;;  %s239_s2 = inlined_call_operand.vmem [shape: bf16[1,32], index: 2, kind: input, shape index: {}]   ;;  %s240_s3 = inlined_call_operand.hbm [shape: f32[1,8], index: 3, kind: output, shape index: {}]  }
   0x1   :  { %v173_v0 = vld [vmem:[%s238_s1 + $0x8] sm:$0xff]   ;;  %156 = vmatprep.subr.bf16.mxu0 %v199_v1  ;;  %164 = vmatprep.subr.bf16.mxu1 %v199_v1 }
   0x2   :  { %v40_v2 = vsel %vm32_vm0, %v173_v0, 0 }
   0x3   :  { %8 = vsyncpa [#allocation3], 0  ;;  %157 = vmatpush3.bf16.xpose.msra.mxu0 %v40_v2  ;;  %vm200_vm1 = vmmov 0   ;;  %v174_v3 = vld [vmem:[%s238_s1] sm:$0xff]   ;;  %vm84_vm2 = vcmask 261120   ;;  %s201_s19 = smov [#allocation2]  }
   0x4   :  { %160 = vmatprep.mubr.msk.bf16.mxu0 %vm200_vm1, %v199_v1  ;;  %158 = vmatprep.subr.bf16.mxu0 %v199_v1  ;;  %v37_v4 = vsel %vm32_vm0, %v174_v3, 0  ;;  %v16_v5 = vld [vmem:[%s237_s0] sm:$0xf]  ;;  %s139_s20 = sshll.u32 %s201_s19, 4  ;;  %vm131_vm3 = vcmask 57344   ;;  %s140_s20 = int_to_ptr.vmem [resolvable:$true] %s139_s20 }
   0x5   :  { %166 = vmatprep.mubr.msk.bf16.mxu1 %vm200_vm1, %v199_v1  ;;  %v21_v13 = vld [vmem:[%s239_s2] sm:$0x1]  ;;  %s177_s0 = scalar_lea.vmem %s140_s20, 16  ;;  %s181_s21 = scalar_lea.vmem %s140_s20, 32 }
   0x6   :  { %p178_p0 = scmp.ne.s32.totalorder %s140_s20, %s177_s0  ;;  %p182_p1 = scmp.lt.s32.totalorder %s140_s20, %s140_s20 }
   0x7   :  { %p183_p2 = scmp.lt.s32.totalorder %s181_s21, %s177_s0 }
   0x9   :  { %p184_p3 = por %p183_p2, %p182_p1 }
   0xb   :  { %159 = vmatpush3.bf16.xpose.msra.mxu0 %v37_v4  ;;  %p185_p4 = pnand %p184_p3, %p178_p0 }
  0x12   :  { %161 = vmatmul.mubr.msk.bf16.vlgmr.msra.gmra.mxu0 %vm32_vm0, %v16_v5 }
  0xd2   :  { %v76_v6 = vpop.f32.mrf.mxu0 }
  0xd3   :  { %175 = vtanh.f32 %v76_v6 }
  0xd4   :  { %v162_v7 = vpop.f32.mrf.mxu0 }
  0xd6   :  { %v79_v8 = vpop.f32.mrf.mxu0 }
  0xd8   :  { %v163_v9 = vpop.f32.mrf.mxu0 }
  0xe0   :  { %v176_v10 = vpop.eup %175 }
  0xe1   :  { %v83_v11 = vpack.c.bf16 %v176_v10, %v176_v10 }
  0xe3   :  { %v89_v12 = vsel %vm84_vm2, %v83_v11, 0 }
  0xe4   :  { %165 = vmatpush3.bf16.xpose.msra.mxu1 %v89_v12 }
  0xeb   :  { %167 = vmatmul.mubr.msk.bf16.vlgmr.msra.gmra.mxu1 %vm84_vm2, %v21_v13 }
 0x1ab   :  { %v125_v14 = vpop.f32.mrf.mxu1 }
 0x1ac   :  { %132 = vst.msk [vmem:[#allocation2] sm:$0x1] %vm131_vm3, %v125_v14 }
 0x1ad   :  { %v168_v15 = vpop.f32.mrf.mxu1 }
 0x1ae   :  { %188 = shalt.err (!%p185_p4)
}
 0x1af   :  { %142 = dma.vmem_to_hbm [thread:$0]  %s140_s20, 16, %s240_s3, [#allocation3]   ;;  %v128_v16 = vpop.f32.mrf.mxu1 }
 0x1b1   :  { %v169_v17 = vpop.f32.mrf.mxu1 }
 0x1b2   :  { %197 = dma.done.wait [#allocation3], 16  }
 0x1b3   :  { %198 = vsyncadd [#allocation3], 4294967280 }
 0x1b4   :  { %146 = vsyncpa [#allocation3], 1 }

// kernel: tpu_custom_call.1
= control target key start
LH: loop header
LB: loop body
LE: loop exit
PB: predicated region body
PF: predicated region fallthrough
CT: control target
= control target key end

     0   :  { %v199_v1 = vmov 0.0   ;;  %vm32_vm0 = vcmask 130048   ;;  %s237_s0 = inlined_call_operand.vmem [shape: bf16[8,16], index: 0, kind: input, shape index: {}]   ;;  %s238_s1 = inlined_call_operand.vmem [shape: bf16[32,16], index: 1, kind: input, shape index: {}]   ;;  %s239_s2 = inlined_call_operand.vmem [shape: bf16[1,32], index: 2, kind: input, shape index: {}]   ;;  %s240_s3 = inlined_call_operand.hbm [shape: f32[1,8], index: 3, kind: output, shape index: {}]  }
   0x1   :  { %v173_v0 = vld [vmem:[%s238_s1 + $0x8] sm:$0xff]   ;;  %156 = vmatprep.subr.bf16.mxu0 %v199_v1  ;;  %164 = vmatprep.subr.bf16.mxu1 %v199_v1 }
   0x2   :  { %v40_v2 = vsel %vm32_vm0, %v173_v0, 0 }
   0x3   :  { %8 = vsyncpa [#allocation3], 0  ;;  %157 = vmatpush3.bf16.xpose.msra.mxu0 %v40_v2  ;;  %vm200_vm1 = vmmov 0   ;;  %v174_v3 = vld [vmem:[%s238_s1] sm:$0xff]   ;;  %vm84_vm2 = vcmask 261120   ;;  %s201_s19 = smov [#allocation2]  }
   0x4   :  { %160 = vmatprep.mubr.msk.bf16.mxu0 %vm200_vm1, %v199_v1  ;;  %158 = vmatprep.subr.bf16.mxu0 %v199_v1  ;;  %v37_v4 = vsel %vm32_vm0, %v174_v3, 0  ;;  %v16_v5 = vld [vmem:[%s237_s0] sm:$0xf]  ;;  %s139_s20 = sshll.u32 %s201_s19, 4  ;;  %vm131_vm3 = vcmask 57344   ;;  %s140_s20 = int_to_ptr.vmem [resolvable:$true] %s139_s20 }
   0x5   :  { %166 = vmatprep.mubr.msk.bf16.mxu1 %vm200_vm1, %v199_v1  ;;  %v21_v13 = vld [vmem:[%s239_s2] sm:$0x1]  ;;  %s177_s0 = scalar_lea.vmem %s140_s20, 16  ;;  %s181_s21 = scalar_lea.vmem %s140_s20, 32 }
   0x6   :  { %p178_p0 = scmp.ne.s32.totalorder %s140_s20, %s177_s0  ;;  %p182_p1 = scmp.lt.s32.totalorder %s140_s20, %s140_s20 }
   0x7   :  { %p183_p2 = scmp.lt.s32.totalorder %s181_s21, %s177_s0 }
   0x9   :  { %p184_p3 = por %p183_p2, %p182_p1 }
   0xb   :  { %159 = vmatpush3.bf16.xpose.msra.mxu0 %v37_v4  ;;  %p185_p4 = pnand %p184_p3, %p178_p0 }
  0x12   :  { %161 = vmatmul.mubr.msk.bf16.vlgmr.msra.gmra.mxu0 %vm32_vm0, %v16_v5 }
  0xd2   :  { %v76_v6 = vpop.f32.mrf.mxu0 }
  0xd3   :  { %175 = vtanh.f32 %v76_v6 }
  0xd4   :  { %v162_v7 = vpop.f32.mrf.mxu0 }
  0xd6   :  { %v79_v8 = vpop.f32.mrf.mxu0 }
  0xd8   :  { %v163_v9 = vpop.f32.mrf.mxu0 }
  0xe0   :  { %v176_v10 = vpop.eup %175 }
  0xe1   :  { %v83_v11 = vpack.c.bf16 %v176_v10, %v176_v10 }
  0xe3   :  { %v89_v12 = vsel %vm84_vm2, %v83_v11, 0 }
  0xe4   :  { %165 = vmatpush3.bf16.xpose.msra.mxu1 %v89_v12 }
  0xeb   :  { %167 = vmatmul.mubr.msk.bf16.vlgmr.msra.gmra.mxu1 %vm84_vm2, %v21_v13 }
 0x1ab   :  { %v125_v14 = vpop.f32.mrf.mxu1 }
 0x1ac   :  { %132 = vst.msk [vmem:[#allocation2] sm:$0x1] %vm131_vm3, %v125_v14 }
 0x1ad   :  { %v168_v15 = vpop.f32.mrf.mxu1 }
 0x1ae   :  { %188 = shalt.err (!%p185_p4)
}
 0x1af   :  { %142 = dma.vmem_to_hbm [thread:$0]  %s140_s20, 16, %s240_s3, [#allocation3]   ;;  %v128_v16 = vpop.f32.mrf.mxu1 }
 0x1b1   :  { %v169_v17 = vpop.f32.mrf.mxu1 }
 0x1b2   :  { %197 = dma.done.wait [#allocation3], 16  }
 0x1b3   :  { %198 = vsyncadd [#allocation3], 4294967280 }
 0x1b4   :  { %146 = vsyncpa [#allocation3], 1 }

</bundles_post_ra>
